<compile_context>
chip_gen: v6e
topology: v6e:2x2x1
jax: 0.10.0
libtpu: 0.0.40
codegen_flags: <defaults>
</compile_context>

<pallas_src>
import math

import numpy as np

import jax
import jax.numpy as jnp
from jax.experimental import pallas as pl
from jax.experimental.pallas import tpu as pltpu

_MiB = 1024 * 1024

# Compat shim (newer jax: CompilerParams, older: TPUCompilerParams).
_CompilerParams = getattr(pltpu, "CompilerParams", None) or getattr(
    pltpu, "TPUCompilerParams", None)


# ----------------------------- hardware helpers ------------------------------


def _device_kind():
    try:
        return jax.devices()[0].device_kind.lower()
    except Exception:
        return ""


def _is_v5e():
    k = _device_kind()
    return ("v5 lite" in k) or ("v5e" in k) or ("v5lite" in k)


def _is_v7x():
    k = _device_kind()
    return ("v7" in k) or ("tpu7" in k)


def _mxu_n_target():
    # v5e MXU is 4x(128x128) -> 128-wide N tiles; v6e/v7x 2x(256x256) -> 256.
    return 128 if _is_v5e() else 256


def _vmem_capacity_bytes():
    """Physical VMEM; prefer the hardware query, fall back to device_kind."""
    cap = None
    try:
        fn = getattr(pltpu, "get_tpu_info", None)
        if fn is not None:
            cap = int(getattr(fn(), "vmem_capacity_bytes", 0)) or None
    except Exception:
        cap = None
    if cap is None:
        cap = 64 * _MiB if _is_v7x() else 128 * _MiB
    return cap


def _sublane_align(dtype):
    # f32 -> 8 rows/vreg, bf16 -> 16, int8 -> 32.
    return max(8, 32 // np.dtype(dtype).itemsize)


def _pick_tile(dim, target, align):
    """Largest tile <= target that divides dim and is a multiple of `align`
    (falls back to the full dim, which is always a legal full-extent block)."""
    dim = int(dim)
    if dim <= target:
        return dim
    t = (min(target, dim) // align) * align
    while t >= align:
        if dim % t == 0:
            return t
        t -= align
    return dim


# ----------------------------- tiled linear ----------------------------------


def _make_linear_kernel(has_bias):
    def kernel(*refs):
        if has_bias:
            x_ref, w_ref, b_ref, o_ref, acc_ref = refs
        else:
            x_ref, w_ref, o_ref, acc_ref = refs
            b_ref = None

        @pl.when(pl.program_id(2) == 0)
        def _():
            acc_ref[...] = jnp.zeros(acc_ref.shape, acc_ref.dtype)

        acc_ref[...] += jnp.dot(
            x_ref[...], w_ref[...], preferred_element_type=jnp.float32
        )

        @pl.when(pl.program_id(2) == pl.num_programs(2) - 1)
        def _():
            r = acc_ref[...]
            if has_bias:
                r = r + b_ref[...].astype(jnp.float32)
            o_ref[...] = r.astype(o_ref.dtype)

    return kernel


def _pallas_linear(x, w_t, b=None, *, tm_target=512, tk_target=512):
    """x: (M, Din) @ w_t: (Din, Dout) [+ b: (Dout,)] -> (M, Dout)."""
    M, Din = x.shape
    Dout = w_t.shape[1]
    tm = _pick_tile(M, tm_target, _sublane_align(x.dtype))
    tn = _pick_tile(Dout, _mxu_n_target(), 128)
    tk = _pick_tile(Din, tk_target, 128)
    grid = (M // tm, Dout // tn, Din // tk)

    in_specs = [
        pl.BlockSpec((tm, tk), lambda i, j, k: (i, k)),
        pl.BlockSpec((tk, tn), lambda i, j, k: (k, j)),
    ]
    args = [x, w_t]
    if b is not None:
        in_specs.append(pl.BlockSpec((1, tn), lambda i, j, k: (0, j)))
        args.append(b.reshape(1, Dout))

    vmem_limit = int(min(_vmem_capacity_bytes() // 2, 64 * _MiB))
    return pl.pallas_call(
        _make_linear_kernel(b is not None),
        out_shape=jax.ShapeDtypeStruct((M, Dout), x.dtype),
        grid=grid,
        in_specs=in_specs,
        out_specs=pl.BlockSpec((tm, tn), lambda i, j, k: (i, j)),
        scratch_shapes=[pltpu.VMEM((tm, tn), jnp.float32)],
        compiler_params=_CompilerParams(
            dimension_semantics=("parallel", "parallel", "arbitrary"),
            vmem_limit_bytes=vmem_limit,
        ),
    )(*args)


# ----------------------------- attention kernels -----------------------------


def _scores(qh, kh, h, wts_ref, wts_per_head, mask_ref, mask_per_head):
    """f32 (tq, tk) scores for head h: QK^T, * weights, masked_fill."""
    s = jax.lax.dot_general(
        qh, kh, (((1,), (1,)), ((), ())), preferred_element_type=jnp.float32)
    if wts_ref is not None:
        w = wts_ref[0, h if wts_per_head else 0]
        s = s * w.astype(jnp.float32)
    if mask_ref is not None:
        m = mask_ref[0, h if mask_per_head else 0]
        s = jnp.where(m != 0, s, jnp.finfo(jnp.float32).min)
    return s


def _make_attn_kernel(*, num_heads, head_dim, inv_scale, has_wts, wts_per_head,
                      has_mask, mask_per_head, exp_dtype):
    """Materialized-attn path: full Sk resident, writes attn probabilities."""

    def kernel(*refs):
        i = 3
        q_ref, k_ref, v_ref = refs[0], refs[1], refs[2]
        wts_ref = mask_ref = None
        if has_wts:
            wts_ref = refs[i]
            i += 1
        if has_mask:
            mask_ref = refs[i]
            i += 1
        out_ref, attn_ref = refs[i], refs[i + 1]

        # fold 1/sqrt(head_dim) into q once: one (tq, E) multiply.
        q = q_ref[0] * inv_scale          # (tq, E)
        k = k_ref[0]                      # (Sk, E)
        v = v_ref[0]                      # (Sk, E)

        for h in range(num_heads):
            lo = h * head_dim
            qh = q[:, lo:lo + head_dim]
            kh = k[:, lo:lo + head_dim]
            vh = v[:, lo:lo + head_dim]

            s = _scores(qh, kh, h, wts_ref, wts_per_head, mask_ref, mask_per_head)
            mx = jnp.max(s, axis=-1, keepdims=True)
            e = jnp.exp((s - mx).astype(exp_dtype))
            denom = jnp.sum(e.astype(jnp.float32), axis=-1, keepdims=True)
            inv = 1.0 / denom             # exact: parity with torch.softmax
            p = e * inv.astype(e.dtype)

            attn_ref[0, h] = p.astype(attn_ref.dtype)
            oh = jax.lax.dot_general(
                p.astype(v.dtype), vh, (((1,), (0,)), ((), ())),
                preferred_element_type=jnp.float32)
            # per-head lane-slice store -> live state bounded to one head,
            # stores overlap the next head's matmuls.
            out_ref[0, :, lo:lo + head_dim] = oh.astype(out_ref.dtype)

    return kernel


def _make_flash_kernel(*, num_heads, head_dim, inv_scale, has_wts, wts_per_head,
                       has_mask, mask_per_head, exp_dtype):
    """Flash path: Sk tiled over a reduction grid axis, attn never materialized."""

    def kernel(*refs):
        i = 3
        q_ref, k_ref, v_ref = refs[0], refs[1], refs[2]
        wts_ref = mask_ref = None
        if has_wts:
            wts_ref = refs[i]
            i += 1
        if has_mask:
            mask_ref = refs[i]
            i += 1
        out_ref = refs[i]
        m_sc, l_sc, acc_sc = refs[i + 1], refs[i + 2], refs[i + 3]

        kv = pl.program_id(2)

        @pl.when(kv == 0)
        def _():
            m_sc[...] = jnp.full(m_sc.shape, -jnp.inf, m_sc.dtype)
            l_sc[...] = jnp.zeros(l_sc.shape, l_sc.dtype)
            acc_sc[...] = jnp.zeros(acc_sc.shape, acc_sc.dtype)

        q = q_ref[0] * inv_scale          # (tq, E)
        k = k_ref[0]                      # (tk, E)
        v = v_ref[0]                      # (tk, E)

        for h in range(num_heads):
            lo = h * head_dim
            qh = q[:, lo:lo + head_dim]
            kh = k[:, lo:lo + head_dim]
            vh = v[:, lo:lo + head_dim]

            s = _scores(qh, kh, h, wts_ref, wts_per_head, mask_ref, mask_per_head)
            m_prev = m_sc[h]                                        # (tq, 1)
            m_new = jnp.maximum(m_prev, jnp.max(s, axis=-1, keepdims=True))
            alpha = jnp.exp(m_prev - m_new)
            e = jnp.exp((s - m_new).astype(exp_dtype))
            l_sc[h] = alpha * l_sc[h] + jnp.sum(
                e.astype(jnp.float32), axis=-1, keepdims=True)
            pv = jax.lax.dot_general(
                e.astype(v.dtype), vh, (((1,), (0,)), ((), ())),
                preferred_element_type=jnp.float32)
            acc_sc[:, lo:lo + head_dim] = (
                alpha * acc_sc[:, lo:lo + head_dim] + pv)
            m_sc[h] = m_new

        @pl.when(kv == pl.num_programs(2) - 1)
        def _():
            for h in range(num_heads):
                lo = h * head_dim
                inv = 1.0 / l_sc[h]
                out_ref[0, :, lo:lo + head_dim] = (
                    acc_sc[:, lo:lo + head_dim] * inv).astype(out_ref.dtype)

    return kernel


# ----------------------------- attention cores --------------------------------


def _normalize_side(x, Sq, Sk, cast_dtype):
    """4D-ify mask/weights, keep broadcast B/H dims at size 1 (no dense blow-up).
    Mask is kept narrow (int8); weights keep their original dtype."""
    if x is None:
        return None, 1, 1
    x = jnp.asarray(x)
    if cast_dtype is not None:
        x = x.astype(cast_dtype)
    while x.ndim < 4:
        x = x[None]
    bsz, hsz = int(x.shape[0]), int(x.shape[1])
    return jnp.broadcast_to(x, (bsz, hsz, Sq, Sk)), bsz, hsz


def _side_spec_2d(bsz, hsz, tq, sk_blk):
    if bsz == 1:
        return pl.BlockSpec((1, hsz, tq, sk_blk), lambda b, qi: (0, 0, qi, 0))
    return pl.BlockSpec((1, hsz, tq, sk_blk), lambda b, qi: (b, 0, qi, 0))


def _side_spec_3d(bsz, hsz, tq, tk):
    if bsz == 1:
        return pl.BlockSpec((1, hsz, tq, tk), lambda b, qi, kv: (0, 0, qi, kv))
    return pl.BlockSpec((1, hsz, tq, tk), lambda b, qi, kv: (b, 0, qi, kv))


def _exp_dtype_for(dtype):
    # bf16 EUP only on v6e/v7x; v5e (and f32 inputs everywhere) stay f32.
    if dtype == jnp.bfloat16 and not _is_v5e():
        return jnp.bfloat16
    return jnp.float32


def _attention_materialized(qp, kp, vp, mask, wts, H, Dh):
    """qp: (B,Sq,E); kp/vp: (B,Sk,E) -> out (B,Sq,E), attn (B,H,Sq,Sk)."""
    B, Sq, E = qp.shape
    Sk = kp.shape[1]
    item = np.dtype(qp.dtype).itemsize
    align = _sublane_align(qp.dtype)
    inv_scale = 1.0 / math.sqrt(Dh)
    budget = int(min(_vmem_capacity_bytes() * 0.7, 96 * _MiB))
    exp_dtype = _exp_dtype_for(qp.dtype)

    mask_a, mB, mH = _normalize_side(mask, Sq, Sk, jnp.int8)
    wts_a, wB, wH = _normalize_side(wts, Sq, Sk, None)
    n_side = int(mask_a is not None) + int(wts_a is not None)

    # generation-aware tq: per-step footprint must fit the VMEM budget
    # (attn block dominates; K/V are resident across qi).
    def footprint(tq):
        bts = 2 * H * tq * Sk * item          # attn output block (x2 buffers)
        bts += 2 * 2 * tq * E * item          # q in + out blocks
        bts += 2 * 2 * Sk * E * item          # resident K and V (x2 buffers)
        bts += n_side * 2 * tq * Sk * 4       # mask/weights blocks (upper bound)
        bts += 6 * tq * Sk * 4                # live f32 s/e/p intermediates
        return bts

    tq = _pick_tile(Sq, 512 if item < 4 else 256, align)
    while footprint(tq) > budget and tq > align:
        nxt = _pick_tile(Sq, tq - align, align)
        if nxt >= tq:
            break
        tq = nxt
    nq = Sq // tq

    # NOTE: K/V index maps are constant across qi; single-buffering them
    # (pl.Buffered) would save 2*Sk*E*itemsize of VMEM where supported.
    in_specs = [
        pl.BlockSpec((1, tq, E), lambda b, qi: (b, qi, 0)),
        pl.BlockSpec((1, Sk, E), lambda b, qi: (b, 0, 0)),
        pl.BlockSpec((1, Sk, E), lambda b, qi: (b, 0, 0)),
    ]
    args = [qp, kp, vp]
    if wts_a is not None:
        in_specs.append(_side_spec_2d(wB, wH, tq, Sk))
        args.append(wts_a)
    if mask_a is not None:
        in_specs.append(_side_spec_2d(mB, mH, tq, Sk))
        args.append(mask_a)

    kernel = _make_attn_kernel(
        num_heads=H, head_dim=Dh, inv_scale=inv_scale,
        has_wts=wts_a is not None, wts_per_head=(wH == H),
        has_mask=mask_a is not None, mask_per_head=(mH == H),
        exp_dtype=exp_dtype)

    out, attn = pl.pallas_call(
        kernel,
        out_shape=(
            jax.ShapeDtypeStruct((B, Sq, E), qp.dtype),
            jax.ShapeDtypeStruct((B, H, Sq, Sk), qp.dtype),
        ),
        grid=(B, nq),
        in_specs=in_specs,
        out_specs=(
            pl.BlockSpec((1, tq, E), lambda b, qi: (b, qi, 0)),
            pl.BlockSpec((1, H, tq, Sk), lambda b, qi: (b, 0, qi, 0)),
        ),
        compiler_params=_CompilerParams(
            dimension_semantics=("parallel", "parallel"),
            vmem_limit_bytes=budget,
        ),
    )(*args)
    return out, attn


def _attention_flash(qp, kp, vp, mask, wts, H, Dh):
    """Online-softmax path (no attn output): VMEM footprint is Sk-independent."""
    B, Sq, E = qp.shape
    Sk = kp.shape[1]
    item = np.dtype(qp.dtype).itemsize
    align = _sublane_align(qp.dtype)
    inv_scale = 1.0 / math.sqrt(Dh)
    budget = int(min(_vmem_capacity_bytes() * 0.7, 96 * _MiB))
    exp_dtype = _exp_dtype_for(qp.dtype)

    mask_a, mB, mH = _normalize_side(mask, Sq, Sk, jnp.int8)
    wts_a, wB, wH = _normalize_side(wts, Sq, Sk, None)

    def footprint(tq, tk):
        bts = 2 * 2 * tq * E * item           # q in + out blocks
        bts += 2 * 2 * tk * E * item          # K + V blocks
        bts += 2 * 2 * tq * tk * 4            # mask/weights blocks (upper bound)
        bts += 6 * tq * tk * 4                # live f32 intermediates
        bts += (2 * H * tq + tq * E) * 4      # m/l/acc scratch
        return bts

    tq = _pick_tile(Sq, 512 if item < 4 else 256, align)
    tk = _pick_tile(Sk, 512, 128)             # lane dim of side blocks -> 128-aligned
    while footprint(tq, tk) > budget and tk > 128:
        nxt = _pick_tile(Sk, tk - 128, 128)
        if nxt >= tk:
            break
        tk = nxt
    while footprint(tq, tk) > budget and tq > align:
        nxt = _pick_tile(Sq, tq - align, align)
        if nxt >= tq:
            break
        tq = nxt
    nq, nk = Sq // tq, Sk // tk

    in_specs = [
        pl.BlockSpec((1, tq, E), lambda b, qi, kv: (b, qi, 0)),
        pl.BlockSpec((1, tk, E), lambda b, qi, kv: (b, kv, 0)),
        pl.BlockSpec((1, tk, E), lambda b, qi, kv: (b, kv, 0)),
    ]
    args = [qp, kp, vp]
    if wts_a is not None:
        in_specs.append(_side_spec_3d(wB, wH, tq, tk))
        args.append(wts_a)
    if mask_a is not None:
        in_specs.append(_side_spec_3d(mB, mH, tq, tk))
        args.append(mask_a)

    kernel = _make_flash_kernel(
        num_heads=H, head_dim=Dh, inv_scale=inv_scale,
        has_wts=wts_a is not None, wts_per_head=(wH == H),
        has_mask=mask_a is not None, mask_per_head=(mH == H),
        exp_dtype=exp_dtype)

    out = pl.pallas_call(
        kernel,
        out_shape=jax.ShapeDtypeStruct((B, Sq, E), qp.dtype),
        grid=(B, nq, nk),
        in_specs=in_specs,
        out_specs=pl.BlockSpec((1, tq, E), lambda b, qi, kv: (b, qi, 0)),
        scratch_shapes=[
            pltpu.VMEM((H, tq, 1), jnp.float32),   # running max per head
            pltpu.VMEM((H, tq, 1), jnp.float32),   # running denom per head
            pltpu.VMEM((tq, E), jnp.float32),      # merged-head accumulator
        ],
        compiler_params=_CompilerParams(
            dimension_semantics=("parallel", "parallel", "arbitrary"),
            vmem_limit_bytes=budget,
        ),
    )(*args)
    return out


# ----------------------------- module ----------------------------------------


def init_attention_params(key, head_dim, q_dim, k_dim=None, v_dim=None,
                          num_heads=8, dtype=jnp.float32):
    """Xavier-uniform init matching the module; weights stored transposed
    (in_features, out_features) so kernels compute x @ W directly."""
    if k_dim is None:
        k_dim = q_dim
    if v_dim is None:
        v_dim = q_dim
    embed_dim = head_dim * num_heads

    def xavier(kk, fan_in, fan_out):
        bound = math.sqrt(6.0 / (fan_in + fan_out))
        return jax.random.uniform(kk, (fan_in, fan_out), dtype,
                                  minval=-bound, maxval=bound)

    kq, kk_, kv, ko = jax.random.split(key, 4)
    return {
        "w_q": xavier(kq, q_dim, embed_dim),
        "w_k": xavier(kk_, k_dim, embed_dim),
        "w_v": xavier(kv, v_dim, embed_dim),
        "w_out": xavier(ko, embed_dim, embed_dim),
        "b_out": jnp.zeros((embed_dim,), dtype),
        "num_heads": num_heads,
        "head_dim": head_dim,
        "embed_dim": embed_dim,
    }


def _project(params, q, k, v):
    """Projections; fuses shared-activation projections into a single matmul."""
    E = params["embed_dim"]
    B, Sq, _ = q.shape
    Sk = k.shape[1]
    q2 = q.reshape(B * Sq, -1)
    k2 = k.reshape(B * Sk, -1)

    if v is None:
        if q is k:
            fused = _pallas_linear(
                q2, jnp.concatenate([params["w_q"], params["w_k"]], axis=1))
            qp, kp = fused[:, :E], fused[:, E:]
        else:
            qp = _pallas_linear(q2, params["w_q"])
            kp = _pallas_linear(k2, params["w_k"])
        vp = kp   # matches PyTorch: v = k (the *projected* k) when v is None
    elif (q is k) and (k is v):
        fused = _pallas_linear(
            q2, jnp.concatenate([params["w_q"], params["w_k"], params["w_v"]],
                                axis=1))
        qp, kp, vp = fused[:, :E], fused[:, E:2 * E], fused[:, 2 * E:]
    elif k is v:
        qp = _pallas_linear(q2, params["w_q"])
        fused = _pallas_linear(
            k2, jnp.concatenate([params["w_k"], params["w_v"]], axis=1))
        kp, vp = fused[:, :E], fused[:, E:]
    else:
        qp = _pallas_linear(q2, params["w_q"])
        kp = _pallas_linear(k2, params["w_k"])
        vp = _pallas_linear(v.reshape(B * Sk, -1), params["w_v"])

    return qp.reshape(B, Sq, E), kp.reshape(B, Sk, E), vp.reshape(B, Sk, E)


def attention_forward(params, q, k, v=None, attn_mask=None, attn_weights=None,
                      return_attn=True):
    """Mirrors Attention.forward. Returns (out [B,Sq,E], attn [B,H,Sq,Sk]).
    With return_attn=False the flash path is used and attn is None.
    Dropout layers are identity (dropout=0.0 / eval mode)."""
    H = params["num_heads"]
    Dh = params["head_dim"]
    E = params["embed_dim"]
    B, Sq, _ = q.shape

    qp, kp, vp = _project(params, q, k, v)

    if return_attn:
        out_h, attn = _attention_materialized(qp, kp, vp, attn_mask,
                                              attn_weights, H, Dh)
    else:
        out_h = _attention_flash(qp, kp, vp, attn_mask, attn_weights, H, Dh)
        attn = None

    out = _pallas_linear(out_h.reshape(B * Sq, E), params["w_out"],
                         params["b_out"]).reshape(B, Sq, E)
    return out, attn


# ----------------------------- pure-JAX reference -----------------------------


def _reference_forward(params, q, k, v=None, attn_mask=None, attn_weights=None):
    H, Dh, E = params["num_heads"], params["head_dim"], params["embed_dim"]
    hi = jax.lax.Precision.HIGHEST
    qp = jnp.einsum("bsd,de->bse", q, params["w_q"], precision=hi)
    kp = jnp.einsum("bsd,de->bse", k, params["w_k"], precision=hi)
    vp = (jnp.einsum("bsd,de->bse", v, params["w_v"], precision=hi)
          if v is not None else kp)
    B, Sq, _ = q.shape
    Sk = k.shape[1]
    qh = qp.reshape(B, Sq, H, Dh).transpose(0, 2, 1, 3)
    kh = kp.reshape(B, Sk, H, Dh).transpose(0, 2, 1, 3)
    vh = vp.reshape(B, Sk, H, Dh).transpose(0, 2, 1, 3)
    s = jnp.einsum("bhqd,bhkd->bhqk", qh, kh, precision=hi) / math.sqrt(Dh)
    if attn_weights is not None:
        s = s * attn_weights
    if attn_mask is not None:
        s = jnp.where(attn_mask, s, jnp.finfo(s.dtype).min)
    attn = jax.nn.softmax(s, axis=-1)
    out = jnp.einsum("bhqk,bhkd->bhqd", attn, vh, precision=hi)
    out = out.transpose(0, 2, 1, 3).reshape(B, Sq, E)
    out = jnp.einsum("bse,ef->bsf", out, params["w_out"], precision=hi)
    out = out + params["b_out"]
    return out, attn


# ----------------------------- demo -------------------------------------------

if __name__ == "__main__":
    key = jax.random.PRNGKey(0)
    k_params, k_q, k_k, k_v, k_w = jax.random.split(key, 5)

    # small shapes: batch=2, seq=8, q_dim=k_dim=v_dim=32, heads=4, head_dim=16
    B, Sq, Sk = 2, 8, 8
    q_dim = 32
    num_heads, head_dim = 4, 16

    params = init_attention_params(k_params, head_dim, q_dim,
                                   num_heads=num_heads)

    q = jax.random.normal(k_q, (B, Sq, q_dim), jnp.float32)
    k = jax.random.normal(k_k, (B, Sk, q_dim), jnp.float32)
    v = jax.random.normal(k_v, (B, Sk, q_dim), jnp.float32)

    # causal bool mask (broadcast over B,H) and positive weights (broadcast over H)
    attn_mask = jnp.tril(jnp.ones((Sq, Sk), dtype=bool))[None, None]   # (1,1,Sq,Sk)
    attn_weights = jax.random.uniform(k_w, (B, 1, Sq, Sk), jnp.float32,
                                      minval=0.5, maxval=1.5)

    # 1) cross-attention with mask + weights, attn materialized (module parity)
    out, attn = attention_forward(params, q, k, v, attn_mask=attn_mask,
                                  attn_weights=attn_weights)
    ref_out, ref_attn = _reference_forward(params, q, k, v, attn_mask=attn_mask,
                                           attn_weights=attn_weights)
    jax.block_until_ready((out, attn))
    assert out.shape == (B, Sq, num_heads * head_dim)
    assert attn.shape == (B, num_heads, Sq, Sk)
    assert jnp.allclose(jnp.sum(attn, axis=-1), 1.0, atol=1e-3)
    assert jnp.allclose(out, ref_out, atol=2e-2, rtol=2e-2)
    assert jnp.allclose(attn, ref_attn, atol=2e-2, rtol=2e-2)

    # 2) same inputs through the flash (attn-free, Sk-tiled online-softmax) path
    out_f, attn_f = attention_forward(params, q, k, v, attn_mask=attn_mask,
                                      attn_weights=attn_weights,
                                      return_attn=False)
    jax.block_until_ready(out_f)
    assert attn_f is None
    assert jnp.allclose(out_f, ref_out, atol=2e-2, rtol=2e-2)

    # 3) self-attention with v=None (fused q/k projection, no mask/weights)
    out_s, attn_s = attention_forward(params, q, q)
    ref_out_s, ref_attn_s = _reference_forward(params, q, q)
    jax.block_until_ready((out_s, attn_s))
    assert jnp.allclose(out_s, ref_out_s, atol=2e-2, rtol=2e-2)
    assert jnp.allclose(attn_s, ref_attn_s, atol=2e-2, rtol=2e-2)

    print("KERNEL_OK")
</pallas_src>

<mosaic_0001>
module attributes {stable_mosaic.version = 11 : i64} {
  func.func @kernel(%arg0: i32, %arg1: i32, %arg2: i32, %arg3: memref<16x32xf32, #tpu.memory_space<vmem>>, %arg4: memref<32x64xf32, #tpu.memory_space<vmem>>, %arg5: memref<16x64xf32, #tpu.memory_space<vmem>>, %arg6: memref<16x64xf32, #tpu.memory_space<vmem>>) attributes {dimension_semantics = [#tpu.dimension_semantics<parallel>, #tpu.dimension_semantics<parallel>, #tpu.dimension_semantics<arbitrary>], iteration_bounds = array<i64: 1, 1, 1>, scalar_prefetch = 0 : i64, scratch_operands = 1 : i64, tpu.core_type = #tpu.core_type<tc>, window_params = [{transform_indices = @transform_0, window_bounds = array<i64: 16, 32>}, {transform_indices = @transform_1, window_bounds = array<i64: 32, 64>}, {transform_indices = @transform_2, window_bounds = array<i64: 16, 64>}]} {
    %c0_i32 = arith.constant 0 : i32
    %0 = arith.cmpi eq, %arg2, %c0_i32 : i32
    %1 = arith.extui %0 : i1 to i32
    %c0_i32_0 = arith.constant 0 : i32
    %2 = arith.cmpi ne, %1, %c0_i32_0 : i32
    scf.if %2 {
      %cst_10 = arith.constant 0.000000e+00 : f32
      %12 = vector.broadcast %cst_10 : f32 to vector<16x64xf32>
      %c0_11 = arith.constant 0 : index
      %c0_12 = arith.constant 0 : index
      %13 = vector.load %arg6[%c0_11, %c0_12] : memref<16x64xf32, #tpu.memory_space<vmem>>, vector<16x64xf32>
      tpu.vector_store %arg6[%c0_11, %c0_12], %12 {strides = array<i32>} : memref<16x64xf32, #tpu.memory_space<vmem>>, vector<16x64xf32>,
    } else {
    }
    %c0 = arith.constant 0 : index
    %c0_1 = arith.constant 0 : index
    %3 = vector.load %arg6[%c0, %c0_1] : memref<16x64xf32, #tpu.memory_space<vmem>>, vector<16x64xf32>
    %c0_2 = arith.constant 0 : index
    %c0_3 = arith.constant 0 : index
    %4 = vector.load %arg3[%c0_2, %c0_3] : memref<16x32xf32, #tpu.memory_space<vmem>>, vector<16x32xf32>
    %c0_4 = arith.constant 0 : index
    %c0_5 = arith.constant 0 : index
    %5 = vector.load %arg4[%c0_4, %c0_5] : memref<32x64xf32, #tpu.memory_space<vmem>>, vector<32x64xf32>
    %cst = arith.constant dense<0.000000e+00> : vector<16x64xf32>
    %6 = tpu.matmul %4, %5, %cst {dimension_numbers = #tpu.dot_dimension_numbers<[1], [0], [0], [1], [0, 0, 1, 1], [], []>} : vector<16x32xf32>, vector<32x64xf32>, vector<16x64xf32> -> vector<16x64xf32>
    %7 = arith.addf %3, %6 : vector<16x64xf32>
    %c0_6 = arith.constant 0 : index
    %c0_7 = arith.constant 0 : index
    %8 = vector.load %arg6[%c0_6, %c0_7] : memref<16x64xf32, #tpu.memory_space<vmem>>, vector<16x64xf32>
    tpu.vector_store %arg6[%c0_6, %c0_7], %7 {strides = array<i32>} : memref<16x64xf32, #tpu.memory_space<vmem>>, vector<16x64xf32>,
    %c0_i32_8 = arith.constant 0 : i32
    %9 = arith.cmpi eq, %arg2, %c0_i32_8 : i32
    %10 = arith.extui %9 : i1 to i32
    %c0_i32_9 = arith.constant 0 : i32
    %11 = arith.cmpi ne, %10, %c0_i32_9 : i32
    scf.if %11 {
      %c0_10 = arith.constant 0 : index
      %c0_11 = arith.constant 0 : index
      %12 = vector.load %arg6[%c0_10, %c0_11] : memref<16x64xf32, #tpu.memory_space<vmem>>, vector<16x64xf32>
      %c0_12 = arith.constant 0 : index
      %c0_13 = arith.constant 0 : index
      %13 = vector.load %arg5[%c0_12, %c0_13] : memref<16x64xf32, #tpu.memory_space<vmem>>, vector<16x64xf32>
      tpu.vector_store %arg5[%c0_12, %c0_13], %12 {strides = array<i32>} : memref<16x64xf32, #tpu.memory_space<vmem>>, vector<16x64xf32>,
    } else {
    }
    return
  }
  func.func @transform_0(%arg0: i32, %arg1: i32, %arg2: i32) -> (i32, i32) {
    %c0_i32 = arith.constant 0 : i32
    return %arg0, %arg2 : i32, i32
  }
  func.func @transform_1(%arg0: i32, %arg1: i32, %arg2: i32) -> (i32, i32) {
    %c0_i32 = arith.constant 0 : i32
    return %arg2, %arg1 : i32, i32
  }
  func.func @transform_2(%arg0: i32, %arg1: i32, %arg2: i32) -> (i32, i32) {
    %c0_i32 = arith.constant 0 : i32
    return %arg0, %arg1 : i32, i32
  }
}

</mosaic_0001>

<bundles_post_ra>
// kernel: tpu_custom_call.1
= control target key start
LH: loop header
LB: loop body
LE: loop exit
PB: predicated region body
PF: predicated region fallthrough
CT: control target
= control target key end

     0   :  { %7 = vsyncpa [#allocation4], 0  ;;  %s305_s0 = inlined_call_operand.hbm [shape: f32[16,32], index: 0, kind: input, shape index: {}]   ;;  %s306_s1 = inlined_call_operand.hbm [shape: f32[32,64], index: 1, kind: input, shape index: {}]   ;;  %s307_s2 = inlined_call_operand.hbm [shape: f32[16,64], index: 2, kind: output, shape index: {}]  }
   0x1   :  { %8 = vsyncpa [#allocation7], 0 }
   0x2   :  { %9 = vsyncpa [#allocation5], 0  ;;  %s258_s9 = smov [#allocation3]  }
   0x3   :  { %s15_s10 = sshll.u32 %s258_s9, 4  ;;  %s16_s10 = int_to_ptr.vmem [resolvable:$true] %s15_s10 }
   0x4   :  { %s200_s11 = scalar_lea.vmem %s16_s10, 256  ;;  %p205_p1 = scmp.lt.s32.totalorder %s16_s10, %s16_s10 }
   0x5   :  { %p201_p0 = scmp.ne.s32.totalorder %s16_s10, %s200_s11  ;;  %p206_p2 = scmp.lt.s32.totalorder %s200_s11, %s200_s11 }
   0x7   :  { %p207_p3 = por %p206_p2, %p205_p1 }
   0x9   :  { %p208_p4 = pnand %p207_p3, %p201_p0 }
   0xb   :  { %211 = shalt.err (!%p208_p4)
}
   0xc   :  { %s259_s12 = smov 128   ;;  %s260_s13 = smov 8  }
   0xd   :  { %21 = dma.hbm_to_vmem [thread:$0]  %s305_s0, 256, %s16_s10, [#allocation4], %s259_s12, %s259_s12, %s260_s13  }
   0xe   :  { %s261_s16 = smov [#allocation6]  }
   0xf   :  { %s27_s17 = sshll.u32 %s261_s16, 4  ;;  %s28_s17 = int_to_ptr.vmem [resolvable:$true] %s27_s17 }
  0x10   :  { %s220_s18 = scalar_lea.vmem %s28_s17, 512  ;;  %p225_p6 = scmp.lt.s32.totalorder %s28_s17, %s28_s17 }
  0x11   :  { %p221_p5 = scmp.ne.s32.totalorder %s28_s17, %s220_s18  ;;  %p226_p7 = scmp.lt.s32.totalorder %s220_s18, %s220_s18 }
  0x13   :  { %p227_p8 = por %p226_p7, %p225_p6 }
  0x15   :  { %p228_p9 = pnand %p227_p8, %p221_p5 }
  0x17   :  { %231 = shalt.err (!%p228_p9)
}
  0x18   :  { %33 = dma.hbm_to_vmem [thread:$0]  %s306_s1, 512, %s28_s17, [#allocation7], %s259_s12, %s259_s12, %s260_s13  }
  0x19   :  { %252 = dma.done.wait [#allocation4], 256  }
  0x1a   :  { %253 = vsyncadd [#allocation4], 4294967040 }
  0x1b   :  { %254 = dma.done.wait [#allocation7], 512  }
  0x1c   :  { %255 = vsyncadd [#allocation7], 4294966784  ;;  %vm44_vm0 = vcmask 523264   ;;  %v262_v0 = vmov 0.0   ;;  %vm55_vm1 = vcmask 261120   ;;  %v54_v1 = vld [vmem:[#allocation6 + $0x18] sm:$0xff] }
  0x1d   :  { %46 = vst.msk [vmem:[#allocation2 + $0x8] sm:$0xff] %vm44_vm0, %v262_v0  ;;  %45 = vst.msk [vmem:[#allocation2] sm:$0xff] %vm44_vm0, %v262_v0  ;;  %v53_v2 = vld [vmem:[#allocation6 + $0x10] sm:$0xff]  ;;  %175 = vmatprep.subr.mxu0 %v54_v1  ;;  %v52_v4 = vld [vmem:[#allocation6 + $0x8] sm:$0xff]  ;;  %s263_s0 = smov [#allocation8]  }
  0x1e   :  { %v49_v3 = vld [vmem:[#allocation3] sm:$0xff]  ;;  %176 = vmatpush3.msra.mxu0 %v54_v1  ;;  %v51_v5 = vld [vmem:[#allocation6] sm:$0xff]  ;;  %v50_v6 = vld [vmem:[#allocation3 + $0x8] sm:$0xff]  ;;  %s154_s1 = sshll.u32 %s263_s0, 4  ;;  %s155_s1 = int_to_ptr.vmem [resolvable:$true] %s154_s1 }
  0x1f   :  { %183 = vmatprep.mubr.msk.f32.mxu0 %vm55_vm1, %v49_v3  ;;  %177 = vmatprep.subr.mxu0 %v53_v2  ;;  %s232_s21 = scalar_lea.vmem %s155_s1, 256  ;;  %p237_p11 = scmp.lt.s32.totalorder %s155_s1, %s155_s1 }
  0x20   :  { %178 = vmatpush3.msra.mxu0 %v53_v2  ;;  %p233_p10 = scmp.ne.s32.totalorder %s155_s1, %s232_s21  ;;  %p238_p12 = scmp.lt.s32.totalorder %s232_s21, %s232_s21 }
  0x21   :  { %179 = vmatprep.subr.mxu0 %v52_v4 }
  0x22   :  { %180 = vmatpush3.msra.mxu0 %v52_v4  ;;  %p239_p13 = por %p238_p12, %p237_p11 }
  0x23   :  { %181 = vmatprep.subr.mxu0 %v51_v5 }
  0x24   :  { %182 = vmatpush3.msra.mxu0 %v51_v5  ;;  %v48_v7 = vld [vmem:[#allocation2 + $0x8] sm:$0xff]  ;;  %v47_v9 = vld [vmem:[#allocation2] sm:$0xff]  ;;  %p240_p0 = pnand %p239_p13, %p233_p10 }
  0x25   :  { %184 = vmatmul.mubr.msk.f32.vlgmr.msra.gmra.mxu0 %vm55_vm1, %v50_v6 }
  0xe5   :  { %v185_v8 = vpop.f32.mrf.mxu0 }
  0xe6   :  { %v138_v10 = vadd.f32 %v185_v8, %v48_v7 }
  0xe7   :  { %v128_v11 = vpop.f32.mrf.mxu0 }
  0xe8   :  { %141 = vst.msk [vmem:[#allocation2 + $0x8] sm:$0xff] %vm44_vm0, %v138_v10  ;;  %v137_v12 = vadd.f32 %v128_v11, %v47_v9 }
  0xea   :  { %140 = vst.msk [vmem:[#allocation2] sm:$0xff] %vm44_vm0, %v137_v12 }
  0xef   :  { %v146_v13 = vld [vmem:[#allocation2 + $0x8] sm:$0xff] }
  0xf0   :  { %148 = vst.msk [vmem:[#allocation8 + $0x8] sm:$0xff] %vm44_vm0, %v146_v13 }
  0xf1   :  { %v145_v14 = vld [vmem:[#allocation2] sm:$0xff] }
  0xf2   :  { %147 = vst.msk [vmem:[#allocation8] sm:$0xff] %vm44_vm0, %v145_v14 }
  0xf3   :  { %243 = shalt.err (!%p240_p0)
}
  0xf4   :  { %160 = dma.vmem_to_hbm [thread:$0]  %s155_s1, 256, %s307_s2, [#allocation5], %s259_s12, %s259_s12, %s260_s13  }
  0xf5   :  { %256 = dma.done.wait [#allocation5], 256  }
  0xf6   :  { %257 = vsyncadd [#allocation5], 4294967040 }
  0xf7   :  { %164 = vsyncpa [#allocation4], 1 }
  0xf8   :  { %165 = vsyncpa [#allocation7], 1 }
  0xf9   :  { %166 = vsyncpa [#allocation5], 1 }

</bundles_post_ra>
